<compile_context>
chip_gen: v6e
topology: v6e:2x2x1
jax: 0.10.0
libtpu: 0.0.40
codegen_flags: <defaults>
</compile_context>

<pallas_src>
import math

import numpy as np
import jax
import jax.numpy as jnp
from jax import lax
from jax.experimental import pallas as pl
from jax.experimental.pallas import tpu as pltpu

# ----------------------------------------------------------------------------
# Problem sizes (small, consistent with the module)
# ----------------------------------------------------------------------------
BATCH = 2
SEQ = 8
HID = 32
N_HEADS = 4
D_K = HID // N_HEADS            # 8

ROWS = BATCH * SEQ              # 16  flattened (b, s) rows
STACK = N_HEADS * ROWS          # 64  head-stacked (h, b, s) rows
LANES = 128                     # activation-slab lane width
ONES_LANE = 3 * HID             # lane 96 holds the constant 1 (bias folding)
NEG_BIG = -1e30                 # cross-batch block mask (finite -> no NaN)

# weight/mask slab row offsets (all multiples of 16 -> bf16 sublane-tile aligned)
OFF_WQ, OFF_WKV = 0, 128
OFF_MK, OFF_MV, OFF_MSEG = 256, 320, 384
OFF_WO, OFF_BO = 448, 512
SLAB_ROWS, SLAB_COLS = 520, 2 * HID          # (520, 64)

# bf16 MXU operands (f32 accumulation / f32 softmax) per the perf review.
# Set to jnp.float32 for bit-tighter parity with the f32 PyTorch module.
MXU_DTYPE = jnp.bfloat16


# ----------------------------------------------------------------------------
# Pallas kernel: single invocation, whole problem resident in VMEM, 6 MXU ops
# ----------------------------------------------------------------------------
def mha_kernel(data_ref, w_ref, o_ref):
    f32 = jnp.float32

    # All ref slices below are sublane-tile aligned; the only lane slicing is
    # prefix reads at offset 0 (no mid-lane extracts).
    x_rep = data_ref[0:STACK, :]                              # (64,128) [q|k|v|1|0] x4
    x_q = data_ref[0:ROWS, :]                                 # (16,128) query rows
    madd = data_ref[STACK:STACK + ROWS, :].astype(f32)[:, 0:STACK]   # (16,64) additive mask

    w_q = w_ref[OFF_WQ:OFF_WQ + LANES, :]                     # (128,64) Wq^T/sqrt(dk) + bq row
    w_kv = w_ref[OFF_WKV:OFF_WKV + LANES, :]                  # (128,64) [Wk^T | Wv^T] + bias row
    m_k = w_ref[OFF_MK:OFF_MK + STACK, :]                     # (64,64) head block mask (K half)
    m_v = w_ref[OFF_MV:OFF_MV + STACK, :]                     # (64,64) head block mask (V half)
    m_seg = w_ref[OFF_MSEG:OFF_MSEG + STACK, :]               # (64,64) segment-sum matrix
    w_o = w_ref[OFF_WO:OFF_WO + STACK, :]                     # (64,64) Wo^T on rows 32:64
    b_o = w_ref[OFF_BO:OFF_BO + 1, :].astype(f32)             # (1,64)  [bo | 0]

    # --- projections (bias + 1/sqrt(d_k) folded via the constant-1 lane) ----
    q = jnp.dot(x_q, w_q, preferred_element_type=f32)         # (16,64) cols>=32 are 0
    kv = jnp.dot(x_rep, w_kv, preferred_element_type=f32)     # (64,64) [K | V], head-stacked rows
    qb = q.astype(MXU_DTYPE)
    kvb = kv.astype(MXU_DTYPE)

    # --- all heads' scores in one matmul (contract last dims; block-masked) -
    scores = lax.dot_general(qb, kvb * m_k, (((1,), (1,)), ((), ())),
                             preferred_element_type=f32)      # (16,64)

    # --- block-masked softmax (f32 VPU/EUP math) ----------------------------
    s = scores + madd
    m = jnp.max(s, axis=-1, keepdims=True)                    # global row max >= each head's max
    e = jnp.exp(s - m)                                        # masked entries -> exactly 0
    eb = e.astype(MXU_DTYPE)

    # --- context + per-head softmax denominators (2 matmuls) ----------------
    ctx = jnp.dot(eb, kvb * m_v, preferred_element_type=f32)  # (16,64) heads re-gathered in cols 32:64
    den = jnp.dot(eb, m_seg, preferred_element_type=f32)      # (16,64) per-head sums (>0 everywhere)
    ctx = ctx / den                                           # exact normalization

    # --- output projection + bias -------------------------------------------
    y = jnp.dot(ctx.astype(MXU_DTYPE), w_o, preferred_element_type=f32) + b_o
    o_ref[...] = y[:, 0:HID].astype(o_ref.dtype)


# ----------------------------------------------------------------------------
# One-time host-side weight packing (outside the per-call jit path)
# ----------------------------------------------------------------------------
def pack_params(params):
    """Pack all weights/biases/constant masks into one (520, 64) slab."""
    scale = 1.0 / math.sqrt(D_K)
    wq = np.asarray(params["wq"], np.float32)
    wk = np.asarray(params["wk"], np.float32)
    wv = np.asarray(params["wv"], np.float32)
    wo = np.asarray(params["wo"], np.float32)
    bq = np.asarray(params["bq"], np.float32)[0]
    bk = np.asarray(params["bk"], np.float32)[0]
    bv = np.asarray(params["bv"], np.float32)[0]
    bo = np.asarray(params["bo"], np.float32)[0]

    slab = np.zeros((SLAB_ROWS, SLAB_COLS), np.float32)

    # Q projection (pre-scaled by 1/sqrt(d_k)); query features live in lanes 0:H
    slab[OFF_WQ:OFF_WQ + HID, 0:HID] = wq.T * scale
    slab[OFF_WQ + ONES_LANE, 0:HID] = bq * scale

    # K | V projection; key features in lanes H:2H, value features in lanes 2H:3H
    slab[OFF_WKV + HID:OFF_WKV + 2 * HID, 0:HID] = wk.T
    slab[OFF_WKV + ONES_LANE, 0:HID] = bk
    slab[OFF_WKV + 2 * HID:OFF_WKV + 3 * HID, HID:2 * HID] = wv.T
    slab[OFF_WKV + ONES_LANE, HID:2 * HID] = bv

    # Head block masks for the (h, b, s)-stacked rows (row block h = u // ROWS)
    u = np.arange(STACK)[:, None]            # (64,1)
    j = np.arange(SLAB_COLS)[None, :]        # (1,64)
    head_u = u // ROWS
    slab[OFF_MK:OFF_MK + STACK, :] = ((j < HID) & (j // D_K == head_u)).astype(np.float32)
    slab[OFF_MV:OFF_MV + STACK, :] = ((j >= HID) & ((j - HID) // D_K == head_u)).astype(np.float32)
    slab[OFF_MSEG:OFF_MSEG + STACK, :] = np.where(
        j < HID, 1.0, ((j - HID) // D_K == head_u).astype(np.float32))

    # Output projection (acts on ctx columns 32:64) + bias row
    slab[OFF_WO + HID:OFF_WO + 2 * HID, 0:HID] = wo.T
    slab[OFF_BO, 0:HID] = bo

    return jnp.asarray(slab, dtype=MXU_DTYPE)


def _additive_mask(mask):
    """(16, 64) additive score mask: cross-batch blocking + optional user mask."""
    rows_b = np.arange(ROWS) // SEQ                      # batch of query row
    cols_b = (np.arange(STACK) % ROWS) // SEQ            # batch of stacked key row
    base = np.where(rows_b[:, None] == cols_b[None, :], 0.0, NEG_BIG).astype(np.float32)
    add = jnp.asarray(base)
    if mask is not None:
        # PyTorch: scores.masked_fill(mask == 0, -10000.0).  Additive -10000 is
        # equivalent after softmax (exp underflows to exactly 0 either way).
        # TODO(synk): a (query, head) row whose keys are ALL masked yields NaN
        # here, whereas PyTorch returns a uniform distribution; not reachable
        # for causal / padding style masks.
        keep = jnp.broadcast_to(mask != 0, (BATCH, N_HEADS, SEQ, SEQ))
        keep = keep.transpose(0, 2, 1, 3)[:, :, :, None, :]            # (B,S,NH,1,S)
        keep = jnp.broadcast_to(keep, (BATCH, SEQ, N_HEADS, BATCH, SEQ))
        keep = keep.reshape(ROWS, STACK)
        add = add + jnp.where(keep, 0.0, -10000.0)
    return add


# ----------------------------------------------------------------------------
# Per-call wrapper: build the activation slab, one pallas_call with 2 inputs
# ----------------------------------------------------------------------------
def multi_head_attention(query, key, value, wslab, mask=None):
    """query/key/value: (B, S, H) float32. wslab: output of pack_params()."""
    B, S, H = query.shape
    f32 = jnp.float32

    x = jnp.concatenate(
        [query.reshape(ROWS, HID), key.reshape(ROWS, HID), value.reshape(ROWS, HID),
         jnp.ones((ROWS, 1), f32), jnp.zeros((ROWS, LANES - 3 * HID - 1), f32)],
        axis=-1)                                                  # (16,128) [q|k|v|1|0]
    x_rep = jnp.tile(x, (N_HEADS, 1))                             # (64,128) heads on sublanes
    add = jnp.concatenate(
        [_additive_mask(mask), jnp.zeros((ROWS, LANES - STACK), f32)], axis=-1)
    data = jnp.concatenate([x_rep, add], axis=0).astype(MXU_DTYPE)  # (80,128)

    vmem = pltpu.MemorySpace.VMEM
    out = pl.pallas_call(
        mha_kernel,
        out_shape=jax.ShapeDtypeStruct((ROWS, HID), jnp.float32),
        in_specs=[pl.BlockSpec(memory_space=vmem)] * 2,
        out_specs=pl.BlockSpec(memory_space=vmem),
    )(data, wslab)

    return out.reshape(B, S, H)


# ----------------------------------------------------------------------------
# Pure-JAX f32 reference (mirrors the PyTorch forward exactly)
# ----------------------------------------------------------------------------
def mha_reference(query, key, value, params, mask=None):
    B, S, H = query.shape
    q = query @ params["wq"].T + params["bq"][0]
    k = key @ params["wk"].T + params["bk"][0]
    v = value @ params["wv"].T + params["bv"][0]
    q = q.reshape(B, S, N_HEADS, D_K).transpose(0, 2, 1, 3)      # (B, h, S, d_k)
    k = k.reshape(B, S, N_HEADS, D_K).transpose(0, 2, 3, 1)      # (B, h, d_k, S)
    v = v.reshape(B, S, N_HEADS, D_K).transpose(0, 2, 1, 3)      # (B, h, S, d_k)
    scores = jnp.matmul(q, k) / math.sqrt(D_K)
    if mask is not None:
        keep = jnp.broadcast_to(mask != 0, scores.shape)
        scores = jnp.where(keep, scores, -10000.0)
    attn = jax.nn.softmax(scores, axis=-1)
    y = jnp.matmul(attn, v).transpose(0, 2, 1, 3).reshape(B, S, H)
    return y @ params["wo"].T + params["bo"][0]


# ----------------------------------------------------------------------------
# Main
# ----------------------------------------------------------------------------
if __name__ == "__main__":
    root = jax.random.PRNGKey(0)
    keys = jax.random.split(root, 12)

    bound = 1.0 / math.sqrt(HID)
    params = {
        "wq": jax.random.uniform(keys[0], (HID, HID), jnp.float32, -bound, bound),
        "bq": jax.random.uniform(keys[1], (1, HID), jnp.float32, -bound, bound),
        "wk": jax.random.uniform(keys[2], (HID, HID), jnp.float32, -bound, bound),
        "bk": jax.random.uniform(keys[3], (1, HID), jnp.float32, -bound, bound),
        "wv": jax.random.uniform(keys[4], (HID, HID), jnp.float32, -bound, bound),
        "bv": jax.random.uniform(keys[5], (1, HID), jnp.float32, -bound, bound),
        "wo": jax.random.uniform(keys[6], (HID, HID), jnp.float32, -bound, bound),
        "bo": jax.random.uniform(keys[7], (1, HID), jnp.float32, -bound, bound),
    }
    query = jax.random.normal(keys[8], (BATCH, SEQ, HID), jnp.float32)
    key_in = jax.random.normal(keys[9], (BATCH, SEQ, HID), jnp.float32)
    value = jax.random.normal(keys[10], (BATCH, SEQ, HID), jnp.float32)

    wslab = pack_params(params)                     # one-time packing (host side)
    mha = jax.jit(multi_head_attention)

    # tolerance accounts for bf16 MXU operands (f32 accumulation); with
    # MXU_DTYPE = jnp.float32 the kernel matches to ~1e-5.
    tol = 8e-2 if MXU_DTYPE == jnp.bfloat16 else 2e-5

    # mask=None path (matches the module's default forward)
    out = jax.block_until_ready(mha(query, key_in, value, wslab))
    ref = mha_reference(query, key_in, value, params)
    assert out.shape == (BATCH, SEQ, HID)
    assert jnp.allclose(out, ref, atol=tol, rtol=tol), "mismatch vs reference (no mask)"

    # optional attention-mask path (causal mask, broadcastable to (B, h, S, S))
    causal = jnp.tril(jnp.ones((SEQ, SEQ), jnp.float32))[None, None, :, :]
    out_m = jax.block_until_ready(mha(query, key_in, value, wslab, causal))
    ref_m = mha_reference(query, key_in, value, params, causal)
    assert jnp.allclose(out_m, ref_m, atol=tol, rtol=tol), "mismatch vs reference (mask)"

    print("KERNEL_OK")
</pallas_src>

<mosaic_0001>
module attributes {stable_mosaic.version = 11 : i64} {
  func.func @mha_kernel(%arg0: memref<80x128xbf16, #tpu.memory_space<vmem>>, %arg1: memref<520x64xbf16, #tpu.memory_space<vmem>>, %arg2: memref<16x32xf32, #tpu.memory_space<vmem>>) attributes {dimension_semantics = [], scalar_prefetch = 0 : i64, scratch_operands = 0 : i64, tpu.core_type = #tpu.core_type<tc>} {
    %c0 = arith.constant 0 : index
    %c0_0 = arith.constant 0 : index
    %0 = vector.load %arg0[%c0, %c0_0] : memref<80x128xbf16, #tpu.memory_space<vmem>>, vector<64x128xbf16>
    %c0_1 = arith.constant 0 : index
    %c0_2 = arith.constant 0 : index
    %1 = vector.load %arg0[%c0_1, %c0_2] : memref<80x128xbf16, #tpu.memory_space<vmem>>, vector<16x128xbf16>
    %c64 = arith.constant 64 : index
    %c0_3 = arith.constant 0 : index
    %2 = vector.load %arg0[%c64, %c0_3] : memref<80x128xbf16, #tpu.memory_space<vmem>>, vector<16x128xbf16>
    %3 = arith.extf %2 : vector<16x128xbf16> to vector<16x128xf32>
    %4 = vector.extract_strided_slice %3 {offsets = [0, 0], sizes = [16, 64], strides = [1, 1]} : vector<16x128xf32> to vector<16x64xf32>
    %c0_4 = arith.constant 0 : index
    %c0_5 = arith.constant 0 : index
    %5 = vector.load %arg1[%c0_4, %c0_5] : memref<520x64xbf16, #tpu.memory_space<vmem>>, vector<128x64xbf16>
    %c128 = arith.constant 128 : index
    %c0_6 = arith.constant 0 : index
    %6 = vector.load %arg1[%c128, %c0_6] : memref<520x64xbf16, #tpu.memory_space<vmem>>, vector<128x64xbf16>
    %c256 = arith.constant 256 : index
    %c0_7 = arith.constant 0 : index
    %7 = vector.load %arg1[%c256, %c0_7] : memref<520x64xbf16, #tpu.memory_space<vmem>>, vector<64x64xbf16>
    %c320 = arith.constant 320 : index
    %c0_8 = arith.constant 0 : index
    %8 = vector.load %arg1[%c320, %c0_8] : memref<520x64xbf16, #tpu.memory_space<vmem>>, vector<64x64xbf16>
    %c384 = arith.constant 384 : index
    %c0_9 = arith.constant 0 : index
    %9 = vector.load %arg1[%c384, %c0_9] : memref<520x64xbf16, #tpu.memory_space<vmem>>, vector<64x64xbf16>
    %c448 = arith.constant 448 : index
    %c0_10 = arith.constant 0 : index
    %10 = vector.load %arg1[%c448, %c0_10] : memref<520x64xbf16, #tpu.memory_space<vmem>>, vector<64x64xbf16>
    %c512 = arith.constant 512 : index
    %c0_11 = arith.constant 0 : index
    %11 = vector.load %arg1[%c512, %c0_11] : memref<520x64xbf16, #tpu.memory_space<vmem>>, vector<1x64xbf16>
    %12 = arith.extf %11 : vector<1x64xbf16> to vector<1x64xf32>
    %cst = arith.constant dense<0.000000e+00> : vector<16x64xf32>
    %13 = tpu.matmul %1, %5, %cst {dimension_numbers = #tpu.dot_dimension_numbers<[1], [0], [0], [1], [0, 0, 1, 1], [], []>} : vector<16x128xbf16>, vector<128x64xbf16>, vector<16x64xf32> -> vector<16x64xf32>
    %cst_12 = arith.constant dense<0.000000e+00> : vector<64x64xf32>
    %14 = tpu.matmul %0, %6, %cst_12 {dimension_numbers = #tpu.dot_dimension_numbers<[1], [0], [0], [1], [0, 0, 1, 1], [], []>} : vector<64x128xbf16>, vector<128x64xbf16>, vector<64x64xf32> -> vector<64x64xf32>
    %15 = arith.truncf %13 : vector<16x64xf32> to vector<16x64xbf16>
    %16 = arith.truncf %14 : vector<64x64xf32> to vector<64x64xbf16>
    %17 = arith.mulf %16, %7 : vector<64x64xbf16>
    %cst_13 = arith.constant dense<0.000000e+00> : vector<16x64xf32>
    %18 = tpu.matmul %15, %17, %cst_13 {dimension_numbers = #tpu.dot_dimension_numbers<[1], [1], [0], [0], [0, 0, 1, 0], [], []>} : vector<16x64xbf16>, vector<64x64xbf16>, vector<16x64xf32> -> vector<16x64xf32>
    %19 = arith.addf %18, %4 : vector<16x64xf32>
    %cst_14 = arith.constant dense<0xFF800000> : vector<16xf32>
    %20 = vector.multi_reduction <maximumf>, %19, %cst_14 [1] : vector<16x64xf32> to vector<16xf32>
    %21 = vector.shape_cast %20 : vector<16xf32> to vector<16x1xf32>
    %22 = vector.broadcast %21 : vector<16x1xf32> to vector<16x64xf32>
    %23 = arith.subf %19, %22 : vector<16x64xf32>
    %24 = math.exp %23 : vector<16x64xf32>
    %25 = arith.truncf %24 : vector<16x64xf32> to vector<16x64xbf16>
    %26 = arith.mulf %16, %8 : vector<64x64xbf16>
    %cst_15 = arith.constant dense<0.000000e+00> : vector<16x64xf32>
    %27 = tpu.matmul %25, %26, %cst_15 {dimension_numbers = #tpu.dot_dimension_numbers<[1], [0], [0], [1], [0, 0, 1, 1], [], []>} : vector<16x64xbf16>, vector<64x64xbf16>, vector<16x64xf32> -> vector<16x64xf32>
    %cst_16 = arith.constant dense<0.000000e+00> : vector<16x64xf32>
    %28 = tpu.matmul %25, %9, %cst_16 {dimension_numbers = #tpu.dot_dimension_numbers<[1], [0], [0], [1], [0, 0, 1, 1], [], []>} : vector<16x64xbf16>, vector<64x64xbf16>, vector<16x64xf32> -> vector<16x64xf32>
    %29 = arith.divf %27, %28 : vector<16x64xf32>
    %30 = arith.truncf %29 : vector<16x64xf32> to vector<16x64xbf16>
    %cst_17 = arith.constant dense<0.000000e+00> : vector<16x64xf32>
    %31 = tpu.matmul %30, %10, %cst_17 {dimension_numbers = #tpu.dot_dimension_numbers<[1], [0], [0], [1], [0, 0, 1, 1], [], []>} : vector<16x64xbf16>, vector<64x64xbf16>, vector<16x64xf32> -> vector<16x64xf32>
    %32 = vector.broadcast %12 : vector<1x64xf32> to vector<16x64xf32>
    %33 = arith.addf %31, %32 : vector<16x64xf32>
    %34 = vector.extract_strided_slice %33 {offsets = [0, 0], sizes = [16, 32], strides = [1, 1]} : vector<16x64xf32> to vector<16x32xf32>
    %c0_18 = arith.constant 0 : index
    %c0_19 = arith.constant 0 : index
    %35 = vector.load %arg2[%c0_18, %c0_19] : memref<16x32xf32, #tpu.memory_space<vmem>>, vector<16x32xf32>
    tpu.vector_store %arg2[%c0_18, %c0_19], %34 {strides = array<i32>} : memref<16x32xf32, #tpu.memory_space<vmem>>, vector<16x32xf32>,
    return
  }
}

</mosaic_0001>

<bundles_post_ra>
// kernel: multi_head_attention.1
= control target key start
LH: loop header
LB: loop body
LE: loop exit
PB: predicated region body
PF: predicated region fallthrough
CT: control target
= control target key end

     0   :  { %v902_v2 = vmov 0.0   ;;  %vm903_vm0 = vmmov 0   ;;  %s1083_s0 = inlined_call_operand.vmem [shape: bf16[80,128], index: 0, kind: input, shape index: {}]   ;;  %s1084_s1 = inlined_call_operand.vmem [shape: bf16[520,64], index: 1, kind: input, shape index: {}]   ;;  %s1085_s2 = inlined_call_operand.hbm [shape: f32[16,32], index: 2, kind: output, shape index: {}]  }
   0x1   :  { %v836_v0 = vld [vmem:[%s1084_s1 + $0x78] sm:$0xff]   ;;  %v837_v1 = vld [vmem:[%s1084_s1 + $0x70] sm:$0xff]   ;;  %739 = vmatprep.subr.bf16.mxu0 %v902_v2  ;;  %755 = vmatprep.mubr.msk.bf16.mxu0 %vm903_vm0, %v902_v2  ;;  %v838_v3 = vld [vmem:[%s1084_s1 + $0x68] sm:$0xff]  }
   0x2   :  { %759 = vmatprep.subr.bf16.mxu1 %v836_v0  ;;  %v839_v4 = vld [vmem:[%s1084_s1 + $0x60] sm:$0xff]   ;;  %v846_v6 = vld [vmem:[%s1084_s1 + $0x38] sm:$0xff]   ;;  %v849_v8 = vld [vmem:[%s1084_s1 + $0x30] sm:$0xff]  }
   0x3   :  { %760 = vmatpush3.bf16.msra.mxu1 %v836_v0  ;;  %v844_v5 = vld [vmem:[%s1083_s0] sm:$0xff]   ;;  %v840_v7 = vld [vmem:[%s1084_s1 + $0x58] sm:$0xff]   ;;  %740 = vmatpush3.bf16.msra.mxu0 %v846_v6  ;;  %v841_v9 = vld [vmem:[%s1084_s1 + $0x50] sm:$0xff]  }
   0x4   :  { %761 = vmatprep.subr.bf16.mxu1 %v837_v1  ;;  %775 = vmatprep.mubr.bf16.mxu1 %v844_v5  ;;  %v850_v10 = vld [vmem:[%s1084_s1 + $0x28] sm:$0xff]   ;;  %v851_v12 = vld [vmem:[%s1084_s1 + $0x20] sm:$0xff]   ;;  %v852_v14 = vld [vmem:[%s1084_s1 + $0x18] sm:$0xff]  }
   0x5   :  { %741 = vmatprep.subr.bf16.mxu0 %v902_v2  ;;  %v842_v11 = vld [vmem:[%s1084_s1 + $0x48] sm:$0xff]   ;;  %v843_v13 = vld [vmem:[%s1084_s1 + $0x40] sm:$0xff]   ;;  %v853_v15 = vld [vmem:[%s1084_s1 + $0x10] sm:$0xff]  }
   0x6   :  { %v845_v16 = vld [vmem:[%s1083_s0 + $0x8] sm:$0xff]  }
   0x7   :  { %762 = vmatpush3.bf16.msra.mxu1 %v837_v1  ;;  %742 = vmatpush3.bf16.msra.mxu0 %v849_v8 }
   0x8   :  { %763 = vmatprep.subr.bf16.mxu1 %v838_v3  ;;  %743 = vmatprep.subr.bf16.mxu0 %v902_v2 }
   0xb   :  { %764 = vmatpush3.bf16.msra.mxu1 %v838_v3  ;;  %744 = vmatpush3.bf16.msra.mxu0 %v850_v10 }
   0xc   :  { %765 = vmatprep.subr.bf16.mxu1 %v839_v4  ;;  %745 = vmatprep.subr.bf16.mxu0 %v902_v2 }
   0xf   :  { %766 = vmatpush3.bf16.msra.mxu1 %v839_v4  ;;  %746 = vmatpush3.bf16.msra.mxu0 %v851_v12 }
  0x10   :  { %767 = vmatprep.subr.bf16.mxu1 %v840_v7  ;;  %747 = vmatprep.subr.bf16.mxu0 %v902_v2 }
  0x13   :  { %768 = vmatpush3.bf16.msra.mxu1 %v840_v7  ;;  %748 = vmatpush3.bf16.msra.mxu0 %v852_v14 }
  0x14   :  { %769 = vmatprep.subr.bf16.mxu1 %v841_v9  ;;  %749 = vmatprep.subr.bf16.mxu0 %v902_v2 }
  0x17   :  { %770 = vmatpush3.bf16.msra.mxu1 %v841_v9 }
  0x18   :  { %771 = vmatprep.subr.bf16.mxu1 %v842_v11 }
  0x1b   :  { %772 = vmatpush3.bf16.msra.mxu1 %v842_v11 }
  0x1c   :  { %773 = vmatprep.subr.bf16.mxu1 %v843_v13 }
  0x1d   :  { %7 = vsyncpa [#allocation3], 0  ;;  %v847_v17 = vld [vmem:[%s1083_s0 + $0x10] sm:$0xff]   ;;  %750 = vmatpush3.bf16.msra.mxu0 %v853_v15  ;;  %v854_v18 = vld [vmem:[%s1084_s1 + $0x8] sm:$0xff]   ;;  %vm350_vm1 = vcmask 523264   ;;  %vm634_vm2 = vcmask 261120  }
  0x1e   :  { %751 = vmatprep.subr.bf16.mxu0 %v902_v2  ;;  %v855_v19 = vld [vmem:[%s1084_s1] sm:$0xff]   ;;  %v848_v20 = vld [vmem:[%s1083_s0 + $0x18] sm:$0xff]   ;;  %v863_v38 = vld [vmem:[%s1084_s1 + $0xb0] sm:$0xff]   ;;  %s904_s28 = smov [#allocation2]  }
  0x1f   :  { %774 = vmatpush3.bf16.msra.mxu1 %v843_v13  ;;  %v860_v28 = vld [vmem:[%s1084_s1 + $0x98] sm:$0xff]   ;;  %v862_v40 = vld [vmem:[%s1084_s1 + $0x90] sm:$0xff]   ;;  %v857_v43 = vld [vmem:[%s1084_s1 + $0xa8] sm:$0xff]   ;;  %s642_s29 = sshll.u32 %s904_s28, 4  ;;  %s643_s29 = int_to_ptr.vmem [resolvable:$true] %s642_s29 }
  0x20   :  { %795 = vmatprep.subr.bf16.mxu1 %v902_v2  ;;  %v861_v29 = vld [vmem:[%s1084_s1 + $0xb8] sm:$0xff]   ;;  %v859_v48 = vld [vmem:[%s1084_s1 + $0xa0] sm:$0xff]   ;;  %v856_v49 = vld [vmem:[%s1084_s1 + $0x88] sm:$0xff]   ;;  %s880_s30 = scalar_lea.vmem %s643_s29, 256  ;;  %p885_p1 = scmp.lt.s32.totalorder %s643_s29, %s643_s29 }
  0x21   :  { %752 = vmatpush3.bf16.msra.mxu0 %v854_v18  ;;  %v858_v53 = vld [vmem:[%s1084_s1 + $0x80] sm:$0xff]   ;;  %v864_v14 = vld [vmem:[%s1084_s1 + $0xd8] sm:$0xff]   ;;  %p881_p0 = scmp.ne.s32.totalorder %s643_s29, %s880_s30  ;;  %p886_p2 = scmp.lt.s32.totalorder %s880_s30, %s880_s30 }
  0x22   :  { %776 = vmatmul.mubr.bf16.vlgmr.msra.gmra.mxu1 %v845_v16  ;;  %753 = vmatprep.subr.bf16.mxu0 %v902_v2  ;;  %v697_v58 = vld [vmem:[%s1083_s0 + $0x20] sm:$0xff]   ;;  %v865_v16 = vld [vmem:[%s1084_s1 + $0xd0] sm:$0xff]  }
  0x23   :  { %779 = vmatprep.mubr.bf16.mxu1 %v847_v17  ;;  %v695_v59 = vunpack.c.l.bf16 %v697_v58  ;;  %v696_v62 = vunpack.c.h.bf16 %v697_v58  ;;  %v866_v17 = vld [vmem:[%s1084_s1 + $0xc8] sm:$0xff]   ;;  %v867_v18 = vld [vmem:[%s1084_s1 + $0xc0] sm:$0xff]   ;;  %p887_p3 = por %p886_p2, %p885_p1 }
  0x25   :  { %754 = vmatpush3.bf16.msra.mxu0 %v855_v19  ;;  %v868_v19 = vld [vmem:[%s1084_s1 + $0xf8] sm:$0xff]   ;;  %p888_p4 = pnand %p887_p3, %p881_p0 }
  0x26   :  { %783 = vmatprep.subr.bf16.mxu0 %v902_v2 }
  0x28   :  { %756 = vmatmul.mubr.bf16.vlgmr.msra.gmra.mxu0 %v844_v5 }
  0x29   :  { %791 = vmatprep.mubr.msk.bf16.mxu0 %vm903_vm0, %v902_v2 }
  0x2a   :  { %780 = vmatmul.mubr.bf16.gmra.mxu1 %v848_v20  ;;  %v869_v20 = vld [vmem:[%s1084_s1 + $0xf0] sm:$0xff]  }
  0x2b   :  { %803 = vmatprep.mubr.msk.bf16.mxu1 %vm903_vm0, %v902_v2 }
  0xe2   :  { %v777_v21 = vpop.f32.mrf.mxu1 }
  0xe4   :  { %v286_v22 = vpop.f32.mrf.mxu1 }
  0xe6   :  { %v778_v23 = vpop.f32.mrf.mxu1 }
  0xe7   :  { %v319_v42 = vpack.c.bf16 %v778_v23, %v777_v21  ;;  %v870_v21 = vld [vmem:[%s1084_s1 + $0xe8] sm:$0xff]  }
  0xe8   :  { %v289_v24 = vpop.f32.mrf.mxu1  ;;  %v179_v26 = vpop.f32.mrf.mxu0 }
  0xe9   :  { %v445_v46 = vmul.bf16 %v857_v43, %v319_v42  ;;  %v318_v47 = vpack.c.bf16 %v289_v24, %v286_v22  ;;  %v347_v52 = vmul.bf16 %v856_v49, %v319_v42  ;;  %v871_v22 = vld [vmem:[%s1084_s1 + $0xe0] sm:$0xff]  }
  0xea   :  { %v781_v25 = vpop.f32.mrf.mxu1  ;;  %v757_v30 = vpop.f32.mrf.mxu0 }
  0xeb   :  { %v444_v51 = vmul.bf16 %v859_v48, %v318_v47  ;;  %v358_v54 = vsel %vm350_vm1, %v347_v52, 0  ;;  %v346_v55 = vmul.bf16 %v858_v53, %v318_v47 }
  0xec   :  { %v302_v27 = vpop.f32.mrf.mxu1  ;;  %v182_v33 = vpop.f32.mrf.mxu0 }
  0xed   :  { %v355_v56 = vsel %vm350_vm1, %v346_v55, 0  ;;  %v317_v57 = vpack.c.bf16 %v182_v33, %v179_v26 }
  0xee   :  { %v782_v31 = vpop.f32.mrf.mxu1  ;;  %v758_v39 = vpop.f32.mrf.mxu0 }
  0xef   :  { %v321_v32 = vpack.c.bf16 %v782_v31, %v781_v25 }
  0xf0   :  { %v305_v34 = vpop.f32.mrf.mxu1 }
  0xf1   :  { %v349_v35 = vmul.bf16 %v860_v28, %v321_v32  ;;  %v447_v36 = vmul.bf16 %v861_v29, %v321_v32  ;;  %v320_v37 = vpack.c.bf16 %v305_v34, %v302_v27 }
  0xf3   :  { %796 = vmatpush3.bf16.msra.mxu1 %v447_v36  ;;  %v364_v41 = vsel %vm350_vm1, %v349_v35, 0  ;;  %v446_v44 = vmul.bf16 %v863_v38, %v320_v37  ;;  %v348_v45 = vmul.bf16 %v862_v40, %v320_v37  ;;  %v562_v36 = vlaneseq  ;;  %v89_v37 = vld [vmem:[%s1084_s1 + $0x100] sm:$0x1] }
  0xf4   :  { %784 = vmatpush3.bf16.xpose.msra.mxu0 %v364_v41  ;;  %797 = vmatprep.subr.bf16.mxu1 %v902_v2  ;;  %v90_v38 = vunpack.c.l.bf16 %v89_v37 }
  0xf5   :  { %785 = vmatprep.subr.bf16.mxu0 %v902_v2  ;;  %v361_v50 = vsel %vm350_vm1, %v348_v45, 0 }
  0xf7   :  { %798 = vmatpush3.bf16.msra.mxu1 %v446_v44 }
  0xf8   :  { %799 = vmatprep.subr.bf16.mxu1 %v902_v2 }
  0xfb   :  { %800 = vmatpush3.bf16.msra.mxu1 %v445_v46 }
  0xfc   :  { %786 = vmatpush3.bf16.xpose.msra.mxu0 %v361_v50  ;;  %801 = vmatprep.subr.bf16.mxu1 %v902_v2 }
  0xfd   :  { %787 = vmatprep.subr.bf16.mxu0 %v902_v2 }
  0xff   :  { %802 = vmatpush3.bf16.msra.mxu1 %v444_v51 }
 0x100   :  { %807 = vmatprep.subr.bf16.mxu1 %v902_v2 }
 0x104   :  { %788 = vmatpush3.bf16.xpose.msra.mxu0 %v358_v54 }
 0x105   :  { %789 = vmatprep.subr.bf16.mxu0 %v902_v2 }
 0x10c   :  { %790 = vmatpush3.bf16.xpose.msra.mxu0 %v355_v56 }
 0x10d   :  { %819 = vmatprep.subr.bf16.mxu0 %v902_v2 }
 0x113   :  { %792 = vmatmul.mubr.msk.bf16.vlgmr.msra.gmra.mxu0 %vm350_vm1, %v317_v57 }
 0x114   :  { %827 = vmatprep.mubr.msk.bf16.mxu0 %vm903_vm0, %v902_v2  ;;  %820 = vmatpush3.bf16.msra.mxu0 %v868_v19 }
 0x115   :  { %821 = vmatprep.subr.bf16.mxu0 %v902_v2 }
 0x118   :  { %822 = vmatpush3.bf16.msra.mxu0 %v869_v20 }
 0x119   :  { %823 = vmatprep.subr.bf16.mxu0 %v902_v2 }
 0x11c   :  { %824 = vmatpush3.bf16.msra.mxu0 %v870_v21 }
 0x11d   :  { %825 = vmatprep.subr.bf16.mxu0 %v902_v2 }
 0x120   :  { %826 = vmatpush3.bf16.msra.mxu0 %v871_v22 }
 0x1d3   :  { %v400_v60 = vpop.f32.mrf.mxu0 }
 0x1d4   :  { %v401_v61 = vadd.f32 %v695_v59, %v400_v60 }
 0x1d5   :  { %v793_v63 = vpop.f32.mrf.mxu0 }
 0x1d6   :  { %v407_v0 = vsel %vm350_vm1, %v401_v61, -inf }
 0x1d7   :  { %408 = vmax.xlane.f32.xlu0 %v407_v0  ;;  %v403_v1 = vpop.f32.mrf.mxu0 }
 0x1d8   :  { %v404_v3 = vadd.f32 %v696_v62, %v403_v1 }
 0x1d9   :  { %v794_v4 = vpop.f32.mrf.mxu0 }
 0x1da   :  { %v410_v5 = vsel %vm350_vm1, %v404_v3, -inf }
 0x1db   :  { %411 = vmax.xlane.f32.xlu0 %v410_v5 }
 0x260   :  { %v409_v6 = vpop.xlane.xlu0 %408 }
 0x261   :  { %v413_v7 = vsub.f32 %v401_v61, %v409_v6 }
 0x263   :  { %v415_v8 = vmul.f32 1.442695, %v413_v7 }
 0x264   :  { %v412_v9 = vpop.xlane.xlu0 %411 }
 0x265   :  { %v414_v10 = vsub.f32 %v404_v3, %v412_v9  ;;  %872 = vpow2.f32 %v415_v8 }
 0x267   :  { %v417_v11 = vmul.f32 1.442695, %v414_v10 }
 0x269   :  { %874 = vpow2.f32 %v417_v11 }
 0x272   :  { %v873_v12 = vpop.eup %872 }
 0x276   :  { %v875_v13 = vpop.eup %874 }
 0x277   :  { %v419_v15 = vpack.c.bf16 %v875_v13, %v873_v12 }
 0x279   :  { %804 = vmatmul.mubr.msk.bf16.vlgmr.msra.gmra.mxu1 %vm350_vm1, %v419_v15 }
 0x27a   :  { %808 = vmatpush3.bf16.msra.mxu1 %v864_v14  ;;  %815 = vmatprep.mubr.msk.bf16.mxu1 %vm903_vm0, %v902_v2 }
 0x27b   :  { %809 = vmatprep.subr.bf16.mxu1 %v902_v2 }
 0x27e   :  { %810 = vmatpush3.bf16.msra.mxu1 %v865_v16 }
 0x27f   :  { %811 = vmatprep.subr.bf16.mxu1 %v902_v2 }
 0x282   :  { %812 = vmatpush3.bf16.msra.mxu1 %v866_v17 }
 0x283   :  { %813 = vmatprep.subr.bf16.mxu1 %v902_v2  ;;  %v563_v2 = vshrl.u32 %v562_v36, 7 }
 0x285   :  { %v564_v39 = vsub.s32 0, %v563_v2 }
 0x286   :  { %814 = vmatpush3.bf16.msra.mxu1 %v867_v18 }
 0x287   :  { %v565_v40 = vrot.slane %v90_v38, %v564_v39 }
 0x289   :  { %816 = vmatmul.mubr.msk.bf16.vlgmr.msra.gmra.mxu1 %vm350_vm1, %v419_v15 }
 0x339   :  { %v485_v23 = vpop.f32.mrf.mxu1 }
 0x33b   :  { %v805_v24 = vpop.f32.mrf.mxu1 }
 0x33d   :  { %v488_v25 = vpop.f32.mrf.mxu1 }
 0x33f   :  { %v806_v26 = vpop.f32.mrf.mxu1 }
 0x349   :  { %v550_v27 = vpop.f32.mrf.mxu1 }
 0x34a   :  { %876 = vrcp.f32 %v550_v27 }
 0x34b   :  { %v817_v28 = vpop.f32.mrf.mxu1 }
 0x34d   :  { %v553_v29 = vpop.f32.mrf.mxu1 }
 0x34e   :  { %878 = vrcp.f32 %v553_v29 }
 0x34f   :  { %v818_v30 = vpop.f32.mrf.mxu1 }
 0x357   :  { %v877_v31 = vpop.eup %876 }
 0x358   :  { %v558_v33 = vmul.f32 %v877_v31, %v485_v23 }
 0x35b   :  { %v879_v32 = vpop.eup %878 }
 0x35c   :  { %v560_v34 = vmul.f32 %v879_v32, %v488_v25 }
 0x35e   :  { %v561_v35 = vpack.c.bf16 %v560_v34, %v558_v33 }
 0x360   :  { %828 = vmatmul.mubr.msk.bf16.vlgmr.msra.gmra.mxu0 %vm350_vm1, %v561_v35 }
 0x420   :  { %v627_v41 = vpop.f32.mrf.mxu0 }
 0x421   :  { %v628_v42 = vadd.f32 %v627_v41, %v565_v40 }
 0x422   :  { %v829_v43 = vpop.f32.mrf.mxu0 }
 0x423   :  { %635 = vst.msk [vmem:[#allocation2] sm:$0xff] %vm634_vm2, %v628_v42 }
 0x424   :  { %v630_v44 = vpop.f32.mrf.mxu0 }
 0x425   :  { %v631_v45 = vadd.f32 %v630_v44, %v565_v40 }
 0x426   :  { %v830_v46 = vpop.f32.mrf.mxu0 }
 0x427   :  { %636 = vst.msk [vmem:[#allocation2 + $0x8] sm:$0xff] %vm634_vm2, %v631_v45 }
 0x428   :  { %891 = shalt.err (!%p888_p4)
}
 0x429   :  { %s905_s1 = smov 128   ;;  %s906_s3 = smov 8  }
 0x42a   :  { %648 = dma.vmem_to_hbm [thread:$0]  %s643_s29, 256, %s1085_s2, [#allocation3], %s905_s1, %s905_s1, %s906_s3  }
 0x42b   :  { %900 = dma.done.wait [#allocation3], 256  }
 0x42c   :  { %901 = vsyncadd [#allocation3], 4294967040 }
 0x42d   :  { %652 = vsyncpa [#allocation3], 1 }

</bundles_post_ra>
